<compile_context>
chip_gen: v7x
topology: tpu7x:2x2x1
jax: 0.10.0
libtpu: 0.0.40
codegen_flags: <defaults>
</compile_context>

<pallas_src>
import math

import jax
import jax.numpy as jnp
from jax.experimental import pallas as pl
from jax.experimental.pallas import tpu as pltpu

_HID1 = 128
_HID2 = 64
_NOUT = 3
_NOUT_PAD = 128   # lane-dense padded output width
_SLOPE = 0.2      # LeakyReLU slope from the spec: nn.LeakyReLU(0.2)


def _round_up(x, m):
    return ((x + m - 1) // m) * m


def _cdiv(a, b):
    return (a + b - 1) // b


def _leaky_relu(x, slope=_SLOPE):
    return jnp.where(x >= 0, x, slope * x)


def _vmem_budget_bytes():
    """Scoped-VMEM cap: ~48 MiB on v7x (64 MiB physical), ~96 MiB on v5e/v6e."""
    try:
        cap = int(pltpu.get_tpu_info().vmem_capacity_bytes)
    except Exception:
        cap = 64 << 20  # conservative fallback (v7x per-TensorCore VMEM)
    return min(int(0.75 * cap), 100 << 20)


def classnet_kernel(x_ref, w1_ref, b1_ref, w2_ref, b2_ref, w3_ref, b3_ref, o_ref):
    x = x_ref[...]  # (TB, D) bf16

    # Layer 1: bf16 matmul, f32 accumulate, f32 bias + LeakyReLU, downcast.
    h1 = jnp.dot(x, w1_ref[...], preferred_element_type=jnp.float32) + b1_ref[...]
    h1 = _leaky_relu(h1).astype(jnp.bfloat16)

    # Layer 2.
    h2 = jnp.dot(h1, w2_ref[...], preferred_element_type=jnp.float32) + b2_ref[...]
    h2 = _leaky_relu(h2).astype(jnp.bfloat16)

    # Layer 3: w3/b3 are zero-padded to 128 lanes -> full-vreg, unmasked stores.
    h3 = jnp.dot(h2, w3_ref[...], preferred_element_type=jnp.float32) + b3_ref[...]
    o_ref[...] = h3.astype(o_ref.dtype)


def classnet_forward(x_flat, params):
    """x_flat: (B, D) array. Returns (B, 3) float32."""
    B, D = x_flat.shape

    # bf16 matmul operands (halves dominant x HBM traffic); biases stay f32.
    x_bf = x_flat.astype(jnp.bfloat16)
    w1 = params["w1"].astype(jnp.bfloat16)
    w2 = params["w2"].astype(jnp.bfloat16)
    b1 = params["b1"].astype(jnp.float32)
    b2 = params["b2"].astype(jnp.float32)
    # Zero-pad final layer to a lane-dense (64, 128) / (1, 128) layout.
    w3p = jnp.zeros((_HID2, _NOUT_PAD), jnp.bfloat16).at[:, :_NOUT].set(
        params["w3"].astype(jnp.bfloat16))
    b3p = jnp.zeros((1, _NOUT_PAD), jnp.float32).at[:, :_NOUT].set(
        params["b3"].astype(jnp.float32))

    vmem_cap = _vmem_budget_bytes()

    # Per-batch-row VMEM footprint inside the kernel (bytes).
    per_row = (2 * 2 * D                          # bf16 x, double-buffered
               + 2 * 2 * _NOUT_PAD                # bf16 out, double-buffered
               + 4 * (_HID1 + _HID2 + _NOUT_PAD)  # f32 activations
               + 2 * (_HID1 + _HID2))             # bf16 activation copies
    tb_budget = max(16, int((0.6 * vmem_cap) // per_row))

    # Batch tile: multiple of 16 (bf16 sublane packing), no larger than needed.
    TB = min(tb_budget, _round_up(B, 16), 8192)
    TB = max(16, _round_up(TB, 16))
    # Keep >= 2 grid steps for non-trivial batches so the "parallel" axis can
    # actually split across both TensorCores on v7x.
    if _cdiv(B, TB) == 1 and B >= 32:
        TB = _round_up(_cdiv(B, 2), 16)

    grid = (_cdiv(B, TB),)  # ragged last block handled by Pallas (no jnp.pad)

    weight_bytes = (2 * 2 * (D * _HID1 + _HID1 * _HID2 + _HID2 * _NOUT_PAD)
                    + 2 * 4 * (_HID1 + _HID2 + _NOUT_PAD))
    vmem_limit = max(min(int(1.5 * (TB * per_row + weight_bytes)), vmem_cap),
                     16 << 20)

    def const(shape):
        return pl.BlockSpec(shape, lambda i: (0, 0))

    out_padded = pl.pallas_call(
        classnet_kernel,
        out_shape=jax.ShapeDtypeStruct((B, _NOUT_PAD), jnp.bfloat16),
        grid=grid,
        in_specs=[
            pl.BlockSpec((TB, D), lambda i: (i, 0)),           # x: streamed per batch tile
            const((D, _HID1)), const((1, _HID1)),              # w1 (bf16), b1 (f32): resident
            const((_HID1, _HID2)), const((1, _HID2)),          # w2 (bf16), b2 (f32): resident
            const((_HID2, _NOUT_PAD)), const((1, _NOUT_PAD)),  # w3p (bf16), b3p (f32): resident
        ],
        out_specs=pl.BlockSpec((TB, _NOUT_PAD), lambda i: (i, 0)),
        compiler_params=pltpu.CompilerParams(
            dimension_semantics=("parallel",),
            vmem_limit_bytes=vmem_limit,
        ),
    )(x_bf, w1, b1, w2, b2, w3p, b3p)

    return out_padded[:, :_NOUT].astype(jnp.float32)


def init_params(len_input, key):
    """PyTorch-Linear-style init: U[-1/sqrt(fan_in), 1/sqrt(fan_in)], f32 master."""
    D = int(math.prod(len_input))
    dims = [(D, _HID1), (_HID1, _HID2), (_HID2, _NOUT)]
    params = {}
    keys = jax.random.split(key, 2 * len(dims))
    for i, (fan_in, fan_out) in enumerate(dims):
        bound = 1.0 / math.sqrt(fan_in)
        params[f"w{i + 1}"] = jax.random.uniform(
            keys[2 * i], (fan_in, fan_out), minval=-bound, maxval=bound,
            dtype=jnp.float32)
        params[f"b{i + 1}"] = jax.random.uniform(
            keys[2 * i + 1], (1, fan_out), minval=-bound, maxval=bound,
            dtype=jnp.float32)
    return params


def classnet_apply(x, params):
    """Full module forward: flatten trailing dims, run kernel, squeeze."""
    B = x.shape[0]
    x_flat = x.reshape(B, -1)
    out = classnet_forward(x_flat, params)
    return jnp.squeeze(out)  # matches torch.squeeze(decision)


if __name__ == "__main__":
    key = jax.random.PRNGKey(0)
    k_x, k_p = jax.random.split(key)

    len_input = (4, 16, 16)   # prod = 1024 input features
    B = 2
    x = jax.random.normal(k_x, (B,) + len_input, dtype=jnp.float32)
    params = init_params(len_input, k_p)

    out = classnet_apply(x, params)
    out = jax.block_until_ready(out)

    # Sanity check against plain-JAX f32 reference (same bf16-rounded input;
    # bf16 weights in the kernel => loose tolerance).
    xf = x.reshape(B, -1).astype(jnp.bfloat16).astype(jnp.float32)
    h = _leaky_relu(xf @ params["w1"] + params["b1"])
    h = _leaky_relu(h @ params["w2"] + params["b2"])
    ref = jnp.squeeze(h @ params["w3"] + params["b3"])
    assert out.shape == ref.shape == (B, _NOUT)
    assert jnp.allclose(out, ref, atol=3e-2, rtol=3e-2)

    print("KERNEL_OK")
</pallas_src>

<mosaic_0001>
module attributes {stable_mosaic.version = 11 : i64} {
  func.func @classnet_kernel(%arg0: i32, %arg1: memref<16x1024xbf16, #tpu.memory_space<vmem>>, %arg2: memref<1024x128xbf16, #tpu.memory_space<vmem>>, %arg3: memref<1x128xf32, #tpu.memory_space<vmem>>, %arg4: memref<128x64xbf16, #tpu.memory_space<vmem>>, %arg5: memref<1x64xf32, #tpu.memory_space<vmem>>, %arg6: memref<64x128xbf16, #tpu.memory_space<vmem>>, %arg7: memref<1x128xf32, #tpu.memory_space<vmem>>, %arg8: memref<16x128xbf16, #tpu.memory_space<vmem>>) attributes {dimension_semantics = [#tpu.dimension_semantics<parallel>], iteration_bounds = array<i64: 1>, scalar_prefetch = 0 : i64, scratch_operands = 0 : i64, tpu.core_type = #tpu.core_type<tc>, window_params = [{transform_indices = @transform_0, window_bounds = array<i64: 16, 1024>}, {pipeline_mode = #tpu.pipeline_mode<synchronous>, transform_indices = @transform_1, window_bounds = array<i64: 1024, 128>}, {pipeline_mode = #tpu.pipeline_mode<synchronous>, transform_indices = @transform_2, window_bounds = array<i64: 1, 128>}, {pipeline_mode = #tpu.pipeline_mode<synchronous>, transform_indices = @transform_3, window_bounds = array<i64: 128, 64>}, {pipeline_mode = #tpu.pipeline_mode<synchronous>, transform_indices = @transform_4, window_bounds = array<i64: 1, 64>}, {pipeline_mode = #tpu.pipeline_mode<synchronous>, transform_indices = @transform_5, window_bounds = array<i64: 64, 128>}, {pipeline_mode = #tpu.pipeline_mode<synchronous>, transform_indices = @transform_6, window_bounds = array<i64: 1, 128>}, {transform_indices = @transform_7, window_bounds = array<i64: 16, 128>}]} {
    %c0 = arith.constant 0 : index
    %c0_0 = arith.constant 0 : index
    %0 = vector.load %arg1[%c0, %c0_0] : memref<16x1024xbf16, #tpu.memory_space<vmem>>, vector<16x1024xbf16>
    %c0_1 = arith.constant 0 : index
    %c0_2 = arith.constant 0 : index
    %1 = vector.load %arg2[%c0_1, %c0_2] : memref<1024x128xbf16, #tpu.memory_space<vmem>>, vector<1024x128xbf16>
    %cst = arith.constant dense<0.000000e+00> : vector<16x128xf32>
    %2 = tpu.matmul %0, %1, %cst {dimension_numbers = #tpu.dot_dimension_numbers<[1], [0], [0], [1], [0, 0, 1, 1], [], []>} : vector<16x1024xbf16>, vector<1024x128xbf16>, vector<16x128xf32> -> vector<16x128xf32>
    %c0_3 = arith.constant 0 : index
    %c0_4 = arith.constant 0 : index
    %3 = vector.load %arg3[%c0_3, %c0_4] : memref<1x128xf32, #tpu.memory_space<vmem>>, vector<1x128xf32>
    %4 = vector.broadcast %3 : vector<1x128xf32> to vector<16x128xf32>
    %5 = arith.addf %2, %4 : vector<16x128xf32>
    %cst_5 = arith.constant 0.000000e+00 : f32
    %6 = vector.broadcast %cst_5 : f32 to vector<16x128xf32>
    %7 = arith.cmpf oge, %5, %6 : vector<16x128xf32>
    %cst_6 = arith.constant 2.000000e-01 : f32
    %8 = vector.broadcast %cst_6 : f32 to vector<16x128xf32>
    %9 = arith.mulf %8, %5 : vector<16x128xf32>
    %10 = arith.select %7, %5, %9 : vector<16x128xi1>, vector<16x128xf32>
    %11 = arith.truncf %10 : vector<16x128xf32> to vector<16x128xbf16>
    %c0_7 = arith.constant 0 : index
    %c0_8 = arith.constant 0 : index
    %12 = vector.load %arg4[%c0_7, %c0_8] : memref<128x64xbf16, #tpu.memory_space<vmem>>, vector<128x64xbf16>
    %cst_9 = arith.constant dense<0.000000e+00> : vector<16x64xf32>
    %13 = tpu.matmul %11, %12, %cst_9 {dimension_numbers = #tpu.dot_dimension_numbers<[1], [0], [0], [1], [0, 0, 1, 1], [], []>} : vector<16x128xbf16>, vector<128x64xbf16>, vector<16x64xf32> -> vector<16x64xf32>
    %c0_10 = arith.constant 0 : index
    %c0_11 = arith.constant 0 : index
    %14 = vector.load %arg5[%c0_10, %c0_11] : memref<1x64xf32, #tpu.memory_space<vmem>>, vector<1x64xf32>
    %15 = vector.broadcast %14 : vector<1x64xf32> to vector<16x64xf32>
    %16 = arith.addf %13, %15 : vector<16x64xf32>
    %cst_12 = arith.constant 0.000000e+00 : f32
    %17 = vector.broadcast %cst_12 : f32 to vector<16x64xf32>
    %18 = arith.cmpf oge, %16, %17 : vector<16x64xf32>
    %cst_13 = arith.constant 2.000000e-01 : f32
    %19 = vector.broadcast %cst_13 : f32 to vector<16x64xf32>
    %20 = arith.mulf %19, %16 : vector<16x64xf32>
    %21 = arith.select %18, %16, %20 : vector<16x64xi1>, vector<16x64xf32>
    %22 = arith.truncf %21 : vector<16x64xf32> to vector<16x64xbf16>
    %c0_14 = arith.constant 0 : index
    %c0_15 = arith.constant 0 : index
    %23 = vector.load %arg6[%c0_14, %c0_15] : memref<64x128xbf16, #tpu.memory_space<vmem>>, vector<64x128xbf16>
    %cst_16 = arith.constant dense<0.000000e+00> : vector<16x128xf32>
    %24 = tpu.matmul %22, %23, %cst_16 {dimension_numbers = #tpu.dot_dimension_numbers<[1], [0], [0], [1], [0, 0, 1, 1], [], []>} : vector<16x64xbf16>, vector<64x128xbf16>, vector<16x128xf32> -> vector<16x128xf32>
    %c0_17 = arith.constant 0 : index
    %c0_18 = arith.constant 0 : index
    %25 = vector.load %arg7[%c0_17, %c0_18] : memref<1x128xf32, #tpu.memory_space<vmem>>, vector<1x128xf32>
    %26 = vector.broadcast %25 : vector<1x128xf32> to vector<16x128xf32>
    %27 = arith.addf %24, %26 : vector<16x128xf32>
    %28 = arith.truncf %27 : vector<16x128xf32> to vector<16x128xbf16>
    %c0_19 = arith.constant 0 : index
    %c0_20 = arith.constant 0 : index
    %29 = vector.load %arg8[%c0_19, %c0_20] : memref<16x128xbf16, #tpu.memory_space<vmem>>, vector<16x128xbf16>
    tpu.vector_store %arg8[%c0_19, %c0_20], %28 {strides = array<i32>} : memref<16x128xbf16, #tpu.memory_space<vmem>>, vector<16x128xbf16>,
    return
  }
  func.func @transform_0(%arg0: i32) -> (i32, i32) {
    %c0_i32 = arith.constant 0 : i32
    %c0_i32_0 = arith.constant 0 : i32
    return %arg0, %c0_i32 : i32, i32
  }
  func.func @transform_1(%arg0: i32) -> (i32, i32) {
    %c0_i32 = arith.constant 0 : i32
    %c0_i32_0 = arith.constant 0 : i32
    %c0_i32_1 = arith.constant 0 : i32
    return %c0_i32, %c0_i32_0 : i32, i32
  }
  func.func @transform_2(%arg0: i32) -> (i32, i32) {
    %c0_i32 = arith.constant 0 : i32
    %c0_i32_0 = arith.constant 0 : i32
    %c0_i32_1 = arith.constant 0 : i32
    return %c0_i32, %c0_i32_0 : i32, i32
  }
  func.func @transform_3(%arg0: i32) -> (i32, i32) {
    %c0_i32 = arith.constant 0 : i32
    %c0_i32_0 = arith.constant 0 : i32
    %c0_i32_1 = arith.constant 0 : i32
    return %c0_i32, %c0_i32_0 : i32, i32
  }
  func.func @transform_4(%arg0: i32) -> (i32, i32) {
    %c0_i32 = arith.constant 0 : i32
    %c0_i32_0 = arith.constant 0 : i32
    %c0_i32_1 = arith.constant 0 : i32
    return %c0_i32, %c0_i32_0 : i32, i32
  }
  func.func @transform_5(%arg0: i32) -> (i32, i32) {
    %c0_i32 = arith.constant 0 : i32
    %c0_i32_0 = arith.constant 0 : i32
    %c0_i32_1 = arith.constant 0 : i32
    return %c0_i32, %c0_i32_0 : i32, i32
  }
  func.func @transform_6(%arg0: i32) -> (i32, i32) {
    %c0_i32 = arith.constant 0 : i32
    %c0_i32_0 = arith.constant 0 : i32
    %c0_i32_1 = arith.constant 0 : i32
    return %c0_i32, %c0_i32_0 : i32, i32
  }
  func.func @transform_7(%arg0: i32) -> (i32, i32) {
    %c0_i32 = arith.constant 0 : i32
    %c0_i32_0 = arith.constant 0 : i32
    return %arg0, %c0_i32 : i32, i32
  }
}

</mosaic_0001>

<bundles_post_ra>
// kernel: tpu_custom_call.1
= control target key start
LH: loop header
LB: loop body
LE: loop exit
PB: predicated region body
PF: predicated region fallthrough
CT: control target
= control target key end

     0   :  { %12 = vsyncpa [#allocation3], 0  ;;  %s1739_s0 = inlined_call_operand.vmem [shape: bf16[2,1024], index: 0, kind: input, shape index: {}]   ;;  %s1740_s1 = inlined_call_operand.hbm [shape: bf16[1024,128], index: 1, kind: input, shape index: {}]   ;;  %s1741_s2 = inlined_call_operand.vmem [shape: f32[1,128], index: 2, kind: input, shape index: {}]   ;;  %s1742_s3 = inlined_call_operand.vmem [shape: bf16[128,64], index: 3, kind: input, shape index: {}]   ;;  %s1743_s4 = inlined_call_operand.vmem [shape: f32[1,64], index: 4, kind: input, shape index: {}]   ;;  %s1744_s5 = inlined_call_operand.vmem [shape: bf16[64,128], index: 5, kind: input, shape index: {}]   ;;  %s1745_s6 = inlined_call_operand.vmem [shape: f32[1,128], index: 6, kind: input, shape index: {}]   ;;  %s1746_s7 = inlined_call_operand.hbm [shape: bf16[2,128], index: 7, kind: output, shape index: {}]  }
   0x1   :  { %13 = vsyncpa [#allocation4], 0  ;;  %s1543_s24 = smov [#allocation2]   ;;  %s1495_s28 = scalar_lea.hbm %s1740_s1, 8192 }
   0x2   :  { %s21_s25 = sshll.u32 %s1543_s24, 4  ;;  %p1496_p0 = scmp.ne.s32.totalorder %s1740_s1, %s1495_s28  ;;  %s22_s25 = int_to_ptr.vmem [resolvable:$true] %s21_s25 }
   0x3   :  { %p1499_p1 = scmp.lt.u32.totalorder %s1495_s28, %s1740_s1 }
   0x5   :  { %p1501_p2 = pnand %p1499_p1, %p1496_p0 }
   0x7   :  { %1504 = shalt.err (!%p1501_p2)
}
   0x8   :  { %s1505_s10 = scalar_lea.vmem %s22_s25, 8192  ;;  %p1510_p4 = scmp.lt.s32.totalorder %s22_s25, %s22_s25 }
   0x9   :  { %p1506_p3 = scmp.ne.s32.totalorder %s22_s25, %s1505_s10  ;;  %p1511_p5 = scmp.lt.s32.totalorder %s1505_s10, %s1505_s10 }
   0xb   :  { %p1512_p6 = por %p1511_p5, %p1510_p4 }
   0xd   :  { %p1513_p7 = pnand %p1512_p6, %p1506_p3 }
   0xf   :  { %1516 = shalt.err (!%p1513_p7)
}
  0x10   :  { %s1544_s11 = smov 64   ;;  %s1545_s12 = smov 4  }
  0x11   :  { %27 = dma.hbm_to_vmem [thread:$0]  %s1740_s1, 8192, %s22_s25, [#allocation3], %s1544_s11, %s1544_s11, %s1545_s12  }
  0x12   :  { %1539 = dma.done.wait [#allocation3], 8192  }
  0x13   :  { %1540 = vsyncadd [#allocation3], 4294959104  ;;  %v1407_v0 = vld [vmem:[#allocation2 + $0x40] sm:$0xff]   ;;  %v1411_v4 = vld [vmem:[#allocation2 + $0x48] sm:$0xff]   ;;  %v1546_v25 = vmov 1966171168   ;;  %v204_v27 = vlaneseq }
  0x14   :  { %v1408_v1 = vld [vmem:[#allocation2 + $0xc0] sm:$0xff]   ;;  %1264 = vmatprep.subr.bf16.mxu0 %v1407_v0  ;;  %v1412_v5 = vld [vmem:[#allocation2 + $0xc8] sm:$0xff]   ;;  %v1415_v8 = vld [vmem:[#allocation2 + $0x50] sm:$0xff]   ;;  %v202_v26 = vunpack.c.l.s4 %v1546_v25  ;;  %vm1548_vm0 = vmmov 0   ;;  %vm1050_vm5 = vcmask 523264  }
  0x15   :  { %v1409_v2 = vld [vmem:[#allocation2] sm:$0xff]   ;;  %1286 = vmatprep.subr.bf16.mxu1 %v1408_v1  ;;  %v1413_v6 = vld [vmem:[#allocation2 + $0x8] sm:$0xff]   ;;  %v1416_v9 = vld [vmem:[#allocation2 + $0xd0] sm:$0xff]   ;;  %v205_v33 = vshrl.u32 %v204_v27, 7 }
  0x16   :  { %v1410_v3 = vld [vmem:[#allocation2 + $0x80] sm:$0xff]   ;;  %1265 = vmatpush3.bf16.msra.mxu0 %v1409_v2  ;;  %v1414_v7 = vld [vmem:[#allocation2 + $0x88] sm:$0xff]   ;;  %v1417_v10 = vld [vmem:[#allocation2 + $0x10] sm:$0xff]   ;;  %v203_v32 = vunpack.c.0.s8 %v202_v26 }
  0x17   :  { %1287 = vmatpush3.bf16.msra.mxu1 %v1410_v3  ;;  %1266 = vmatprep.subr.bf16.mxu0 %v1411_v4  ;;  %v1418_v11 = vld [vmem:[#allocation2 + $0x90] sm:$0xff]   ;;  %v1419_v12 = vld [vmem:[#allocation2 + $0x58] sm:$0xff]   ;;  %v1423_v16 = vld [vmem:[#allocation2 + $0x60] sm:$0xff]  }
  0x18   :  { %1288 = vmatprep.subr.bf16.mxu1 %v1412_v5  ;;  %v1420_v13 = vld [vmem:[#allocation2 + $0xd8] sm:$0xff]   ;;  %v1424_v17 = vld [vmem:[#allocation2 + $0xe0] sm:$0xff]   ;;  %v1427_v20 = vld [vmem:[#allocation2 + $0x68] sm:$0xff]   ;;  %v1604_v37 = vsub.s32 %v203_v32, %v205_v33 }
  0x19   :  { %v1421_v14 = vld [vmem:[#allocation2 + $0x18] sm:$0xff]   ;;  %v1425_v18 = vld [vmem:[#allocation2 + $0x20] sm:$0xff]   ;;  %v1428_v21 = vld [vmem:[#allocation2 + $0xe8] sm:$0xff]  }
  0x1a   :  { %1267 = vmatpush3.bf16.msra.mxu0 %v1413_v6  ;;  %v1422_v15 = vld [vmem:[#allocation2 + $0x98] sm:$0xff]   ;;  %v1426_v19 = vld [vmem:[#allocation2 + $0xa0] sm:$0xff]   ;;  %v1429_v22 = vld [vmem:[#allocation2 + $0x28] sm:$0xff]  }
  0x1b   :  { %1289 = vmatpush3.bf16.msra.mxu1 %v1414_v7  ;;  %1268 = vmatprep.subr.bf16.mxu0 %v1415_v8  ;;  %v1430_v23 = vld [vmem:[#allocation2 + $0xa8] sm:$0xff]   ;;  %v1431_v24 = vld [vmem:[#allocation2 + $0x70] sm:$0xff]   ;;  %v1435_v31 = vld [vmem:[#allocation2 + $0x78] sm:$0xff]  }
  0x1c   :  { %1290 = vmatprep.subr.bf16.mxu1 %v1416_v9  ;;  %v1432_v28 = vld [vmem:[#allocation2 + $0xf0] sm:$0xff]   ;;  %v1436_v34 = vld [vmem:[#allocation2 + $0xf8] sm:$0xff]   ;;  %v1439_v38 = vld [vmem:[%s1739_s0] ss:$8 sps:$4 sm:$0xff]  }
  0x1d   :  { %v1433_v29 = vld [vmem:[#allocation2 + $0x30] sm:$0xff]   ;;  %v1437_v35 = vld [vmem:[#allocation2 + $0x38] sm:$0xff]   ;;  %v1441_v39 = vld [vmem:[%s1739_s0 + $0x4] ss:$8 sps:$4 sm:$0xff]   ;;  %v207_v45 = vrot.slane %v1439_v38, %v1604_v37 }
  0x1e   :  { %1269 = vmatpush3.bf16.msra.mxu0 %v1417_v10  ;;  %v1434_v30 = vld [vmem:[#allocation2 + $0xb0] sm:$0xff]   ;;  %v1438_v36 = vld [vmem:[#allocation2 + $0xb8] sm:$0xff]   ;;  %v1445_v42 = vld [vmem:[%s1739_s0 + $0x20] ss:$8 sps:$4 sm:$0xff]   ;;  %v1633_v48 = vrot.slane %v1441_v39, %v1604_v37 }
  0x1f   :  { %1291 = vmatpush3.bf16.msra.mxu1 %v1418_v11  ;;  %1270 = vmatprep.subr.bf16.mxu0 %v1419_v12  ;;  %v1442_v40 = vld [vmem:[%s1739_s0 + $0x10] ss:$8 sps:$4 sm:$0xff]   ;;  %v1444_v41 = vld [vmem:[%s1739_s0 + $0x14] ss:$8 sps:$4 sm:$0xff]   ;;  %v1447_v43 = vld [vmem:[%s1739_s0 + $0x24] ss:$8 sps:$4 sm:$0xff]   ;;  %v235_v50 = vrot.slane %v1445_v42, %v1604_v37 }
  0x20   :  { %1292 = vmatprep.subr.bf16.mxu1 %v1420_v13  ;;  %v1448_v44 = vld [vmem:[%s1739_s0 + $0x30] ss:$8 sps:$4 sm:$0xff]   ;;  %v1450_v46 = vld [vmem:[%s1739_s0 + $0x34] ss:$8 sps:$4 sm:$0xff]   ;;  %v221_v47 = vrot.slane %v1442_v40, %v1604_v37  ;;  %v1636_v49 = vrot.slane %v1444_v41, %v1604_v37  ;;  %v1451_v52 = vld [vmem:[#allocation2 + $0x140] sm:$0xff]   ;;  %v1641_v53 = vrot.slane %v1447_v43, %v1604_v37 }
  0x21   :  { %v249_v51 = vrot.slane %v1448_v44, %v1604_v37  ;;  %v1452_v56 = vld [vmem:[#allocation2 + $0x1c0] sm:$0xff]   ;;  %v1644_v57 = vrot.slane %v1450_v46, %v1604_v37  ;;  %v1455_v10 = vld [vmem:[#allocation2 + $0x148] sm:$0xff]   ;;  %v1475_v32 = vld [vmem:[#allocation2 + $0x170] sm:$0xff]  }
  0x22   :  { %1271 = vmatpush3.bf16.msra.mxu0 %v1421_v14  ;;  %v258_v54 = vcombine.high %v207_v45, %v221_v47  ;;  %v257_v55 = vcombine.low %v207_v45, %v221_v47  ;;  %v260_v58 = vcombine.high %v1633_v48, %v1636_v49  ;;  %v1453_v2 = vld [vmem:[#allocation2 + $0x100] sm:$0xff]   ;;  %v1456_v11 = vld [vmem:[#allocation2 + $0x1c8] sm:$0xff]   ;;  %v1476_v33 = vld [vmem:[#allocation2 + $0x1f0] sm:$0xff]  }
  0x23   :  { %1293 = vmatpush3.bf16.msra.mxu1 %v1422_v15  ;;  %1272 = vmatprep.subr.bf16.mxu0 %v1423_v16  ;;  %v262_v59 = vcombine.high %v235_v50, %v249_v51  ;;  %v261_v60 = vcombine.low %v235_v50, %v249_v51  ;;  %v264_v63 = vcombine.high %v1641_v53, %v1644_v57  ;;  %v1454_v4 = vld [vmem:[#allocation2 + $0x180] sm:$0xff]   ;;  %v1457_v12 = vld [vmem:[#allocation2 + $0x108] sm:$0xff]   ;;  %v1459_v16 = vld [vmem:[#allocation2 + $0x150] sm:$0xff]  }
  0x24   :  { %1294 = vmatprep.subr.bf16.mxu1 %v1424_v17  ;;  %v285_v61 = vrot.slane %v258_v54, %v1604_v37  ;;  %v271_v62 = vrot.slane %v257_v55, %v1604_v37  ;;  %v292_v3 = vrot.slane %v260_v58, %v1604_v37  ;;  %v1458_v15 = vld [vmem:[#allocation2 + $0x188] sm:$0xff]   ;;  %v1460_v17 = vld [vmem:[#allocation2 + $0x1d0] sm:$0xff]   ;;  %v1468_v25 = vld [vmem:[#allocation2 + $0x1e0] sm:$0xff]   ;;  %v263_v38 = vcombine.low %v1641_v53, %v1644_v57 }
  0x25   :  { %v313_v0 = vrot.slane %v262_v59, %v1604_v37  ;;  %v299_v1 = vrot.slane %v261_v60, %v1604_v37  ;;  %v320_v5 = vrot.slane %v264_v63, %v1604_v37  ;;  %v1469_v26 = vld [vmem:[#allocation2 + $0x120] sm:$0xff]   ;;  %v1479_v39 = vld [vmem:[#allocation2 + $0x178] sm:$0xff]   ;;  %v1485_v50 = vld [vmem:[%s1742_s3 + $0x10] sm:$0xff]  }
  0x26   :  { %1273 = vmatpush3.bf16.msra.mxu0 %v1425_v18  ;;  %v1461_v18 = vld [vmem:[#allocation2 + $0x110] sm:$0xff]   ;;  %v1470_v27 = vld [vmem:[#allocation2 + $0x1a0] sm:$0xff]   ;;  %v1480_v40 = vld [vmem:[#allocation2 + $0x1f8] sm:$0xff]   ;;  %v306_v44 = vrot.slane %v263_v38, %v1604_v37 }
  0x27   :  { %1295 = vmatpush3.bf16.msra.mxu1 %v1426_v19  ;;  %1274 = vmatprep.subr.bf16.mxu0 %v1427_v20  ;;  %v325_v6 = vcombine.low %v285_v61, %v313_v0  ;;  %v326_v7 = vcombine.high %v285_v61, %v313_v0  ;;  %v321_v8 = vcombine.low %v271_v62, %v299_v1  ;;  %v1462_v19 = vld [vmem:[#allocation2 + $0x190] sm:$0xff]   ;;  %v1463_v20 = vld [vmem:[#allocation2 + $0x158] sm:$0xff]   ;;  %v1483_v47 = vld [vmem:[%s1742_s3] sm:$0xff]  }
  0x28   :  { %1296 = vmatprep.subr.bf16.mxu1 %v1428_v21  ;;  %v322_v9 = vcombine.high %v271_v62, %v299_v1  ;;  %v327_v13 = vcombine.low %v292_v3, %v320_v5  ;;  %v328_v14 = vcombine.high %v292_v3, %v320_v5  ;;  %v1464_v21 = vld [vmem:[#allocation2 + $0x1d8] sm:$0xff]   ;;  %v1488_v53 = vld [vmem:[%s1742_s3 + $0x28] sm:$0xff]   ;;  %v1489_v54 = vld [vmem:[%s1742_s3 + $0x30] sm:$0xff]  }
  0x29   :  { %753 = vmatprep.mubr.bf16.mxu0 %v325_v6  ;;  %794 = vmatprep.mubr.bf16.mxu1 %v326_v7  ;;  %v1481_v41 = vld [vmem:[#allocation2 + $0x138] sm:$0xff]   ;;  %v1492_v57 = vld [vmem:[%s1744_s5 + $0x8] sm:$0xff]   ;;  %v1179_v60 = vld [vmem:[%s1741_s2] ss:$0 sm:$0xff] }
  0x2a   :  { %1275 = vmatpush3.bf16.msra.mxu0 %v1429_v22  ;;  %v1465_v22 = vld [vmem:[#allocation2 + $0x118] sm:$0xff]  }
  0x2b   :  { %1297 = vmatpush3.bf16.msra.mxu1 %v1430_v23  ;;  %1276 = vmatprep.subr.bf16.mxu0 %v1431_v24  ;;  %v1466_v23 = vld [vmem:[#allocation2 + $0x198] sm:$0xff]   ;;  %v1467_v24 = vld [vmem:[#allocation2 + $0x160] sm:$0xff]  }
  0x2c   :  { %1298 = vmatprep.subr.bf16.mxu1 %v1432_v28  ;;  %v1471_v28 = vld [vmem:[#allocation2 + $0x168] sm:$0xff]   ;;  %v1482_v42 = vld [vmem:[#allocation2 + $0x1b8] sm:$0xff]  }
  0x2d   :  { %v1486_v51 = vld [vmem:[%s1742_s3 + $0x18] sm:$0xff]  }
  0x2e   :  { %1277 = vmatpush3.bf16.msra.mxu0 %v1433_v29  ;;  %v1472_v29 = vld [vmem:[#allocation2 + $0x1e8] sm:$0xff]   ;;  %v1490_v55 = vld [vmem:[%s1742_s3 + $0x38] sm:$0xff]  }
  0x2f   :  { %1299 = vmatpush3.bf16.msra.mxu1 %v1434_v30  ;;  %1278 = vmatprep.subr.bf16.mxu0 %v1435_v31  ;;  %v1473_v30 = vld [vmem:[#allocation2 + $0x128] sm:$0xff]  }
  0x30   :  { %1300 = vmatprep.subr.bf16.mxu1 %v1436_v34  ;;  %v1474_v31 = vld [vmem:[#allocation2 + $0x1a8] sm:$0xff]   ;;  %v1477_v34 = vld [vmem:[#allocation2 + $0x130] sm:$0xff]  }
  0x32   :  { %1279 = vmatpush3.bf16.msra.mxu0 %v1437_v35  ;;  %v1478_v35 = vld [vmem:[#allocation2 + $0x1b0] sm:$0xff]  }
  0x33   :  { %1301 = vmatpush3.bf16.msra.mxu1 %v1438_v36  ;;  %1308 = vmatprep.subr.bf16.mxu0 %v1451_v52  ;;  %v259_v36 = vcombine.low %v1633_v48, %v1636_v49  ;;  %v1547_v48 = vmov 0.0   ;;  %v1484_v49 = vld [vmem:[%s1742_s3 + $0x8] sm:$0xff]   ;;  %v1487_v52 = vld [vmem:[%s1742_s3 + $0x20] sm:$0xff]  }
  0x34   :  { %1330 = vmatprep.subr.bf16.mxu1 %v1452_v56  ;;  %v1491_v56 = vld [vmem:[%s1744_s5] sm:$0xff]  }
  0x35   :  { %754 = vmatmul.mubr.bf16.vlgmr.msra.gmra.mrb[0].mxu0 %v321_v8  ;;  %v278_v43 = vrot.slane %v259_v36, %v1604_v37 }
  0x36   :  { %795 = vmatmul.mubr.bf16.vlgmr.msra.gmra.mrb[0].mxu1 %v322_v9  ;;  %1309 = vmatpush3.bf16.msra.mxu0 %v1453_v2 }
  0x37   :  { %1331 = vmatpush3.bf16.msra.mxu1 %v1454_v4  ;;  %1310 = vmatprep.subr.bf16.mxu0 %v1455_v10  ;;  %v323_v45 = vcombine.low %v278_v43, %v306_v44  ;;  %v324_v46 = vcombine.high %v278_v43, %v306_v44 }
  0x38   :  { %1332 = vmatprep.subr.bf16.mxu1 %v1456_v11  ;;  %835 = vmatprep.mubr.bf16.mxu0 %v327_v13 }
  0x39   :  { %876 = vmatprep.mubr.bf16.mxu1 %v328_v14 }
  0x3a   :  { %1311 = vmatpush3.bf16.msra.mxu0 %v1457_v12 }
  0x3b   :  { %1333 = vmatpush3.bf16.msra.mxu1 %v1458_v15  ;;  %1312 = vmatprep.subr.bf16.mxu0 %v1459_v16 }
  0x3c   :  { %1334 = vmatprep.subr.bf16.mxu1 %v1460_v17 }
  0x3e   :  { %1313 = vmatpush3.bf16.msra.mxu0 %v1461_v18 }
  0x3f   :  { %1335 = vmatpush3.bf16.msra.mxu1 %v1462_v19  ;;  %1314 = vmatprep.subr.bf16.mxu0 %v1463_v20 }
  0x40   :  { %1336 = vmatprep.subr.bf16.mxu1 %v1464_v21 }
  0x42   :  { %1315 = vmatpush3.bf16.msra.mxu0 %v1465_v22 }
  0x43   :  { %1337 = vmatpush3.bf16.msra.mxu1 %v1466_v23  ;;  %1316 = vmatprep.subr.bf16.mxu0 %v1467_v24 }
  0x44   :  { %1338 = vmatprep.subr.bf16.mxu1 %v1468_v25 }
  0x46   :  { %1317 = vmatpush3.bf16.msra.mxu0 %v1469_v26 }
  0x47   :  { %1339 = vmatpush3.bf16.msra.mxu1 %v1470_v27  ;;  %1318 = vmatprep.subr.bf16.mxu0 %v1471_v28 }
  0x48   :  { %1340 = vmatprep.subr.bf16.mxu1 %v1472_v29 }
  0x4a   :  { %1319 = vmatpush3.bf16.msra.mxu0 %v1473_v30 }
  0x4b   :  { %1341 = vmatpush3.bf16.msra.mxu1 %v1474_v31  ;;  %1320 = vmatprep.subr.bf16.mxu0 %v1475_v32  ;;  %v1493_v32 = vld [vmem:[%s1744_s5 + $0x10] sm:$0xff]  }
  0x4c   :  { %1342 = vmatprep.subr.bf16.mxu1 %v1476_v33  ;;  %v1494_v33 = vld [vmem:[%s1744_s5 + $0x18] sm:$0xff]  }
  0x4e   :  { %1321 = vmatpush3.bf16.msra.mxu0 %v1477_v34  ;;  %v1244_v34 = vld [vmem:[%s1743_s4] ss:$0 sm:$0xff] }
  0x4f   :  { %1343 = vmatpush3.bf16.msra.mxu1 %v1478_v35  ;;  %1322 = vmatprep.subr.bf16.mxu0 %v1479_v39 }
  0x50   :  { %1344 = vmatprep.subr.bf16.mxu1 %v1480_v40 }
  0x52   :  { %1323 = vmatpush3.bf16.msra.mxu0 %v1481_v41 }
  0x53   :  { %1345 = vmatpush3.bf16.msra.mxu1 %v1482_v42  ;;  %1366 = vmatprep.subr.bf16.mxu0 %v1547_v48 }
  0x54   :  { %1386 = vmatprep.subr.bf16.mxu1 %v1547_v48 }
  0x55   :  { %836 = vmatmul.mubr.bf16.vlgmr.msra.gmra.mrb[4].mxu0 %v323_v45 }
  0x56   :  { %877 = vmatmul.mubr.bf16.vlgmr.msra.gmra.mrb[4].mxu1 %v324_v46  ;;  %1367 = vmatpush3.bf16.msra.mxu0 %v1483_v47  ;;  %v1253_v47 = vld [vmem:[%s1745_s6] ss:$0 sm:$0xff] }
  0x57   :  { %1368 = vmatprep.subr.bf16.mxu0 %v1547_v48  ;;  %1382 = vmatprep.mubr.msk.bf16.mxu0 %vm1548_vm0, %v1547_v48 }
  0x58   :  { %1394 = vmatprep.mubr.msk.bf16.mxu1 %vm1548_vm0, %v1547_v48  ;;  %1387 = vmatpush3.bf16.msra.mxu1 %v1491_v56 }
  0x59   :  { %1388 = vmatprep.subr.bf16.mxu1 %v1547_v48 }
  0x5a   :  { %1369 = vmatpush3.bf16.msra.mxu0 %v1484_v49 }
  0x5b   :  { %1370 = vmatprep.subr.bf16.mxu0 %v1547_v48 }
  0x5c   :  { %1389 = vmatpush3.bf16.msra.mxu1 %v1492_v57 }
  0x5d   :  { %1390 = vmatprep.subr.bf16.mxu1 %v1547_v48 }
  0x5e   :  { %1371 = vmatpush3.bf16.msra.mxu0 %v1485_v50 }
  0x5f   :  { %1372 = vmatprep.subr.bf16.mxu0 %v1547_v48 }
  0x60   :  { %1391 = vmatpush3.bf16.msra.mxu1 %v1493_v32 }
  0x61   :  { %1392 = vmatprep.subr.bf16.mxu1 %v1547_v48 }
  0x62   :  { %1373 = vmatpush3.bf16.msra.mxu0 %v1486_v51 }
  0x63   :  { %1374 = vmatprep.subr.bf16.mxu0 %v1547_v48 }
  0x64   :  { %1393 = vmatpush3.bf16.msra.mxu1 %v1494_v33 }
  0x66   :  { %1375 = vmatpush3.bf16.msra.mxu0 %v1487_v52 }
  0x67   :  { %1376 = vmatprep.subr.bf16.mxu0 %v1547_v48 }
  0x6a   :  { %1377 = vmatpush3.bf16.msra.mxu0 %v1488_v53 }
  0x6b   :  { %1378 = vmatprep.subr.bf16.mxu0 %v1547_v48 }
  0x6e   :  { %1379 = vmatpush3.bf16.msra.mxu0 %v1489_v54 }
  0x6f   :  { %1380 = vmatprep.subr.bf16.mxu0 %v1547_v48 }
  0x72   :  { %1381 = vmatpush3.bf16.msra.mxu0 %v1490_v55 }
 0x108   :  { %v1280_v58 = vpop.f32.mrb[0].mxu0 }
 0x109   :  { %v1302_v59 = vpop.f32.mrb[0].mxu1  ;;  %v1281_v61 = vpop.f32.mrb[1].mxu0 }
 0x10a   :  { %v1303_v62 = vpop.f32.mrb[1].mxu1  ;;  %v1282_v63 = vadd.f32 %v1281_v61, %v1280_v58  ;;  %v1283_v1 = vpop.f32.mrb[2].mxu0 }
 0x10b   :  { %v1304_v0 = vadd.f32 %v1303_v62, %v1302_v59  ;;  %v1305_v2 = vpop.f32.mrb[2].mxu1  ;;  %v1284_v3 = vpop.f32.mrb[3].mxu0 }
 0x10c   :  { %v1306_v4 = vpop.f32.mrb[3].mxu1  ;;  %v756_v5 = vadd.f32 %v1282_v63, %v1179_v60  ;;  %v1285_v6 = vadd.f32 %v1284_v3, %v1283_v1 }
 0x10d   :  { %v1307_v7 = vadd.f32 %v1306_v4, %v1305_v2 }
 0x10e   :  { %v797_v8 = vadd.f32 %v1304_v0, %v756_v5  ;;  %v759_v9 = vadd.f32 %v1285_v6, %v1179_v60 }
 0x110   :  { %v800_v10 = vadd.f32 %v1307_v7, %v759_v9 }
 0x128   :  { %v1324_v11 = vpop.f32.mrb[4].mxu0 }
 0x129   :  { %v1346_v12 = vpop.f32.mrb[4].mxu1  ;;  %v1325_v13 = vpop.f32.mrb[5].mxu0 }
 0x12a   :  { %v1347_v14 = vpop.f32.mrb[5].mxu1  ;;  %v1326_v15 = vadd.f32 %v1325_v13, %v1324_v11  ;;  %v1327_v17 = vpop.f32.mrb[6].mxu0 }
 0x12b   :  { %v1348_v16 = vadd.f32 %v1347_v14, %v1346_v12  ;;  %v1349_v18 = vpop.f32.mrb[6].mxu1  ;;  %v1328_v19 = vpop.f32.mrb[7].mxu0 }
 0x12c   :  { %v1350_v20 = vpop.f32.mrb[7].mxu1  ;;  %v838_v21 = vadd.f32 %v1326_v15, %v797_v8  ;;  %v1329_v22 = vadd.f32 %v1328_v19, %v1327_v17 }
 0x12d   :  { %v1351_v23 = vadd.f32 %v1350_v20, %v1349_v18 }
 0x12e   :  { %v879_v24 = vadd.f32 %v1348_v16, %v838_v21  ;;  %v841_v25 = vadd.f32 %v1329_v22, %v800_v10 }
 0x130   :  { %v887_v26 = vmul.f32 0.2, %v879_v24  ;;  %v882_v27 = vadd.f32 %v1351_v23, %v841_v25  ;;  %vm885_vm1 = vcmp.ge.f32.partialorder %v879_v24, 0.0 }
 0x132   :  { %vm886_vm2 = vcmp.ge.f32.partialorder %v882_v27, 0.0  ;;  %v888_v28 = vmul.f32 0.2, %v882_v27  ;;  %v889_v29 = vsel %vm885_vm1, %v879_v24, %v887_v26 }
 0x134   :  { %v890_v30 = vsel %vm886_vm2, %v882_v27, %v888_v28 }
 0x135   :  { %v891_v31 = vpack.c.bf16 %v890_v30, %v889_v29 }
 0x137   :  { %1383 = vmatmul.mubr.bf16.vlgmr.msra.gmra.mrb[8].mxu0 %v891_v31 }
 0x20a   :  { %v997_v35 = vpop.f32.mrb[8].mxu0 }
 0x20b   :  { %v998_v36 = vadd.f32 %v1244_v34, %v997_v35  ;;  %v1384_v38 = vpop.f32.mrb[9].mxu0 }
 0x20c   :  { %v1000_v39 = vpop.f32.mrb[10].mxu0 }
 0x20d   :  { %v1006_v40 = vmul.f32 0.2, %v998_v36  ;;  %v1001_v41 = vadd.f32 %v1244_v34, %v1000_v39  ;;  %v1385_v42 = vpop.f32.mrb[11].mxu0  ;;  %vm1004_vm3 = vcmp.ge.f32.partialorder %v998_v36, 0.0 }
 0x20f   :  { %vm1005_vm4 = vcmp.ge.f32.partialorder %v1001_v41, 0.0  ;;  %v1007_v43 = vmul.f32 0.2, %v1001_v41  ;;  %v1008_v44 = vsel %vm1004_vm3, %v998_v36, %v1006_v40 }
 0x211   :  { %v1009_v45 = vsel %vm1005_vm4, %v1001_v41, %v1007_v43 }
 0x212   :  { %v1010_v46 = vpack.c.bf16 %v1009_v45, %v1008_v44 }
 0x214   :  { %1395 = vmatmul.mubr.msk.bf16.vlgmr.msra.gmra.mrb[8].mxu1 %vm1050_vm5, %v1010_v46 }
 0x2e7   :  { %v1088_v48 = vpop.f32.mrb[8].mxu1 }
 0x2e8   :  { %v1396_v49 = vpop.f32.mrb[9].mxu1  ;;  %v1089_v51 = vadd.f32 %v1253_v47, %v1088_v48 }
 0x2e9   :  { %v1091_v50 = vpop.f32.mrb[10].mxu1 }
 0x2ea   :  { %v1092_v52 = vadd.f32 %v1253_v47, %v1091_v50  ;;  %v1397_v53 = vpop.f32.mrb[11].mxu1 }
 0x2ec   :  { %v1095_v54 = vpack.c.bf16 %v1092_v52, %v1089_v51  ;;  %v1259_v55 = vpack.c.bf16 %v1092_v52, %v1092_v52 }
 0x2ee   :  { %v1104_v56 = vrot.slane %v1095_v54, %v1604_v37  ;;  %v1111_v57 = vrot.slane %v1259_v55, %v1604_v37 }
 0x2f0   :  { %v1112_v58 = vcombine.high %v1104_v56, %v1104_v56  ;;  %v1113_v59 = vcombine.high %v1111_v57, %v1111_v57  ;;  %v1120_v60 = vrot.slane %v1104_v56, %v1604_v37  ;;  %v1127_v61 = vrot.slane %v1111_v57, %v1604_v37  ;;  %1260 = vst.sshfl [vmem:[#allocation5] sm:$0x1 pattern:$0x73625140] %v1104_v56 }
 0x2f1   :  { %1262 = vst.sshfl [vmem:[#allocation5 + $0x4] sm:$0x1 pattern:$0x73625140] %v1111_v57 }
 0x2f2   :  { %v1134_v62 = vrot.slane %v1112_v58, %v1604_v37  ;;  %v1141_v63 = vrot.slane %v1113_v59, %v1604_v37  ;;  %v1142_v0 = vcombine.high %v1120_v60, %v1120_v60  ;;  %v1143_v1 = vcombine.high %v1127_v61, %v1127_v61  ;;  %1261 = vst.sshfl [vmem:[#allocation5 + $0x1] sm:$0x1 pattern:$0x73625140] %v1112_v58 }
 0x2f3   :  { %1263 = vst.sshfl [vmem:[#allocation5 + $0x5] sm:$0x1 pattern:$0x73625140] %v1113_v59 }
 0x2f4   :  { %v1144_v2 = vcombine.high %v1134_v62, %v1134_v62  ;;  %v1145_v3 = vcombine.high %v1141_v63, %v1141_v63  ;;  %1156 = vst [vmem:[#allocation5 + $0x2] sm:$0x1] %v1142_v0  ;;  %1160 = vst [vmem:[#allocation5 + $0x6] sm:$0x1] %v1143_v1 }
 0x2f6   :  { %1157 = vst [vmem:[#allocation5 + $0x3] sm:$0x1] %v1144_v2  ;;  %1161 = vst [vmem:[#allocation5 + $0x7] sm:$0x1] %v1145_v3 }
 0x2f7   :  { %1166 = vsyncadd [#allocation4], 112  ;;  %s1549_s4 = smov [#allocation5]  }
 0x2f8   :  { %s1167_s6 = sshll.u32 %s1549_s4, 4  ;;  %s1168_s6 = int_to_ptr.vmem [resolvable:$true] %s1167_s6 }
 0x2f9   :  { %s1517_s8 = scalar_lea.vmem %s1168_s6, 16  ;;  %s1521_s9 = scalar_lea.vmem %s1168_s6, 128 }
 0x2fa   :  { %p1518_p8 = scmp.ne.s32.totalorder %s1168_s6, %s1517_s8  ;;  %p1522_p9 = scmp.lt.s32.totalorder %s1168_s6, %s1168_s6 }
 0x2fb   :  { %p1523_p10 = scmp.lt.s32.totalorder %s1521_s9, %s1517_s8 }
 0x2fd   :  { %p1524_p11 = por %p1523_p10, %p1522_p9 }
 0x2ff   :  { %p1525_p12 = pnand %p1524_p11, %p1518_p8 }
 0x301   :  { %1528 = shalt.err (!%p1525_p12)
}
 0x302   :  { %s1529_s12 = scalar_lea.hbm %s1746_s7, 16 }
 0x303   :  { %p1530_p13 = scmp.ne.s32.totalorder %s1746_s7, %s1529_s12  ;;  %p1533_p0 = scmp.lt.u32.totalorder %s1529_s12, %s1746_s7 }
 0x305   :  { %p1535_p1 = pnand %p1533_p0, %p1530_p13 }
 0x307   :  { %1538 = shalt.err (!%p1535_p1)
}
 0x308   :  { %s1550_s16 = smov 16   ;;  %s1551_s17 = smov 1  }
 0x309   :  { %1173 = dma.vmem_to_hbm [thread:$0]  %s1168_s6, 16, %s1746_s7, [#allocation4], %s1550_s16, %s1550_s16, %s1551_s17  }
 0x30a   :  { %1541 = dma.done.wait [#allocation4], 128  }
 0x30b   :  { %1542 = vsyncadd [#allocation4], 4294967168 }
 0x30c   :  { %1177 = vsyncpa [#allocation3], 1 }
 0x30d   :  { %1178 = vsyncpa [#allocation4], 1 }

</bundles_post_ra>
